<compile_context>
chip_gen: v5e
topology: v5e:2x2
jax: 0.10.0
libtpu: 0.0.40
codegen_flags: <defaults>
</compile_context>

<pallas_src>
import functools

import jax
import jax.numpy as jnp
from jax.experimental import pallas as pl
from jax.experimental.pallas import tpu as pltpu


def _bert_embeddings_kernel(
    x_ref,        # [block_rows, K_total] fused activation tile (bf16)
    w_ref,        # [K_total, hidden] stacked projection weight (bf16)
    b_ref,        # [1, hidden] pre-summed bias (f32)
    gamma_ref,    # [1, hidden] LayerNorm weight (f32)
    beta_ref,     # [1, hidden] LayerNorm bias (f32)
    out_ref,      # [block_rows, hidden]
    *, eps: float,
):
    # Single fused projection on the MXU, accumulated in f32, plus fused bias.
    x = jnp.dot(x_ref[...], w_ref[...], preferred_element_type=jnp.float32)
    x = x + b_ref[...]

    # One-pass LayerNorm statistics over the hidden (last) dim, all in f32.
    hidden = x.shape[-1]
    inv_h = 1.0 / float(hidden)
    s1 = jnp.sum(x, axis=-1, keepdims=True)
    s2 = jnp.sum(x * x, axis=-1, keepdims=True)
    mean = s1 * inv_h
    var = jnp.maximum(s2 * inv_h - mean * mean, 0.0)   # clamp: cancellation guard
    # gamma folded into the rsqrt scale; single normalize/affine pass over x.
    y = (x - mean) * (gamma_ref[...] * jax.lax.rsqrt(var + eps)) + beta_ref[...]

    # TODO(synk): nn.Dropout in training mode (p=hidden_dropout_prob) not applied;
    # inference-mode dropout is the identity.
    out_ref[...] = y.astype(out_ref.dtype)


def bert_embeddings(
    semantic_features,     # [rows, semantic_dim]
    graph_seq_features,    # [rows, graph_seq_dim]
    graph_syn_features,    # [rows, graph_syn_dim]
    params,                # dict of weights/biases/layernorm params (see _init_params)
    *,
    block_rows,            # row-tile size; multiple of 8 (512 v5e, 1024-2048 v6e/v7x)
    eps=1e-12,
    compute_dtype=jnp.bfloat16,
    out_dtype=None,
    vmem_limit_bytes=None,  # raise above the scoped default for big tiles (v6e/v7x)
):
    rows = semantic_features.shape[0]
    assert graph_seq_features.shape[0] == rows and graph_syn_features.shape[0] == rows
    hidden = params["w_sem"].shape[1]
    if out_dtype is None:
        out_dtype = compute_dtype
    assert block_rows >= 8 and block_rows % 8 == 0, \
        "block_rows must be a positive multiple of 8 (sublane tiling)"

    # Don't over-size the tile past the (8-aligned) row count.
    block_rows = min(block_rows, ((rows + 7) // 8) * 8)
    n_blocks = pl.cdiv(rows, block_rows)   # ragged tail handled by Pallas masking

    # Fuse the three activation streams into one bf16 slab.  The cast and concat
    # fuse into a single XLA pass, so this costs the same HBM traffic as the cast
    # alone and removes two DMA streams / two tiny-K matmuls from the kernel.
    x = jnp.concatenate(
        [semantic_features, graph_seq_features, graph_syn_features], axis=-1
    ).astype(compute_dtype)
    k_total = x.shape[1]

    # Stack the projection weights along K (tiny; could be hoisted to param init).
    w = jnp.concatenate(
        [params["w_sem"], params["w_seq"], params["w_syn"]], axis=0
    ).astype(compute_dtype)
    # Bias fusion: the three biases are summed before LayerNorm anyway.
    b_total = (params["b_sem"] + params["b_seq"] + params["b_syn"]).astype(jnp.float32)
    gamma = params["gamma"].astype(jnp.float32)
    beta = params["beta"].astype(jnp.float32)

    def full_spec(shape):
        return pl.BlockSpec(shape, lambda i: (0, 0))

    kernel = functools.partial(_bert_embeddings_kernel, eps=eps)

    out = pl.pallas_call(
        kernel,
        out_shape=jax.ShapeDtypeStruct((rows, hidden), out_dtype),
        grid=(n_blocks,),
        in_specs=[
            pl.BlockSpec((block_rows, k_total), lambda i: (i, 0)),
            full_spec(w.shape),
            full_spec(b_total.shape),
            full_spec(gamma.shape),
            full_spec(beta.shape),
        ],
        out_specs=pl.BlockSpec((block_rows, hidden), lambda i: (i, 0)),
        compiler_params=pltpu.CompilerParams(
            dimension_semantics=("parallel",),
            vmem_limit_bytes=vmem_limit_bytes,
        ),
    )(x, w, b_total, gamma, beta)

    return out


def _init_params(key, semantic_dim, graph_seq_dim, graph_syn_dim, hidden):
    ks = jax.random.split(key, 6)
    scale = 0.02
    return {
        # Stored as [in_dim, hidden] (pre-transposed vs. PyTorch's [hidden, in_dim]).
        "w_sem": scale * jax.random.normal(ks[0], (semantic_dim, hidden), jnp.float32),
        "b_sem": scale * jax.random.normal(ks[1], (1, hidden), jnp.float32),
        "w_seq": scale * jax.random.normal(ks[2], (graph_seq_dim, hidden), jnp.float32),
        "b_seq": scale * jax.random.normal(ks[3], (1, hidden), jnp.float32),
        "w_syn": scale * jax.random.normal(ks[4], (graph_syn_dim, hidden), jnp.float32),
        "b_syn": scale * jax.random.normal(ks[5], (1, hidden), jnp.float32),
        "gamma": jnp.ones((1, hidden), jnp.float32),
        "beta": jnp.zeros((1, hidden), jnp.float32),
    }


def _reference(sem, seq, syn, p, *, eps, compute_dtype=jnp.bfloat16):
    # Mirrors the kernel's dtype handling: bf16 inputs/weights, f32 accumulation & LN.
    f32 = jnp.float32
    x_cat = jnp.concatenate([sem, seq, syn], axis=-1).astype(compute_dtype)
    w_cat = jnp.concatenate([p["w_sem"], p["w_seq"], p["w_syn"]], axis=0).astype(compute_dtype)
    x = jnp.dot(x_cat, w_cat, preferred_element_type=f32)
    x = x + (p["b_sem"] + p["b_seq"] + p["b_syn"]).astype(f32)
    mean = jnp.mean(x, axis=-1, keepdims=True)
    var = jnp.mean((x - mean) ** 2, axis=-1, keepdims=True)
    return (x - mean) / jnp.sqrt(var + eps) * p["gamma"].astype(f32) + p["beta"].astype(f32)


if __name__ == "__main__":
    # Small shapes consistent with the module's forward.  hidden is chosen as a
    # multiple of 128 so the output store is lane-dense (real BERT hidden=768 also is).
    batch, seq_len = 2, 8
    semantic_dim, graph_seq_dim, graph_syn_dim, hidden = 16, 12, 20, 128
    eps = 1e-12

    key = jax.random.PRNGKey(0)
    k_sem, k_seq, k_syn, k_par, k2a, k2b, k2c = jax.random.split(key, 7)

    sem_3d = jax.random.normal(k_sem, (batch, seq_len, semantic_dim), jnp.float32)
    seq_3d = jax.random.normal(k_seq, (batch, seq_len, graph_seq_dim), jnp.float32)
    syn_3d = jax.random.normal(k_syn, (batch, seq_len, graph_syn_dim), jnp.float32)

    params = _init_params(k_par, semantic_dim, graph_seq_dim, graph_syn_dim, hidden)

    rows = batch * seq_len
    sem = sem_3d.reshape(rows, semantic_dim)
    seq = seq_3d.reshape(rows, graph_seq_dim)
    syn = syn_3d.reshape(rows, graph_syn_dim)

    # Primary run: single-block grid (block_rows is clamped down to the row count).
    out = bert_embeddings(sem, seq, syn, params, block_rows=512, eps=eps)
    out = jax.block_until_ready(out)
    out_3d = out.reshape(batch, seq_len, hidden)   # restore [B, S, H] as in PyTorch

    ref = _reference(sem, seq, syn, params, eps=eps).reshape(batch, seq_len, hidden)
    assert out_3d.shape == (batch, seq_len, hidden)
    err = float(jnp.max(jnp.abs(out_3d.astype(jnp.float32) - ref)))
    assert err < 5e-2, err

    # Secondary check: ragged row count (not a multiple of block_rows) with a
    # multi-step parallel grid, exercising the masked tail block.
    rows2 = 300
    sem2 = jax.random.normal(k2a, (rows2, semantic_dim), jnp.float32)
    seq2 = jax.random.normal(k2b, (rows2, graph_seq_dim), jnp.float32)
    syn2 = jax.random.normal(k2c, (rows2, graph_syn_dim), jnp.float32)
    out2 = jax.block_until_ready(
        bert_embeddings(sem2, seq2, syn2, params, block_rows=128, eps=eps))
    ref2 = _reference(sem2, seq2, syn2, params, eps=eps)
    assert out2.shape == (rows2, hidden)
    err2 = float(jnp.max(jnp.abs(out2.astype(jnp.float32) - ref2)))
    assert err2 < 5e-2, err2

    print("KERNEL_OK")
</pallas_src>

<mosaic_0001>
module attributes {stable_mosaic.version = 11 : i64} {
  func.func @_bert_embeddings_kernel(%arg0: i32, %arg1: memref<16x48xbf16, #tpu.memory_space<vmem>>, %arg2: memref<48x128xbf16, #tpu.memory_space<vmem>>, %arg3: memref<1x128xf32, #tpu.memory_space<vmem>>, %arg4: memref<1x128xf32, #tpu.memory_space<vmem>>, %arg5: memref<1x128xf32, #tpu.memory_space<vmem>>, %arg6: memref<16x128xbf16, #tpu.memory_space<vmem>>) attributes {dimension_semantics = [#tpu.dimension_semantics<parallel>], iteration_bounds = array<i64: 1>, scalar_prefetch = 0 : i64, scratch_operands = 0 : i64, tpu.core_type = #tpu.core_type<tc>, window_params = [{transform_indices = @transform_0, window_bounds = array<i64: 16, 48>}, {pipeline_mode = #tpu.pipeline_mode<synchronous>, transform_indices = @transform_1, window_bounds = array<i64: 48, 128>}, {pipeline_mode = #tpu.pipeline_mode<synchronous>, transform_indices = @transform_2, window_bounds = array<i64: 1, 128>}, {pipeline_mode = #tpu.pipeline_mode<synchronous>, transform_indices = @transform_3, window_bounds = array<i64: 1, 128>}, {pipeline_mode = #tpu.pipeline_mode<synchronous>, transform_indices = @transform_4, window_bounds = array<i64: 1, 128>}, {transform_indices = @transform_5, window_bounds = array<i64: 16, 128>}]} {
    %c0 = arith.constant 0 : index
    %c0_0 = arith.constant 0 : index
    %0 = vector.load %arg1[%c0, %c0_0] : memref<16x48xbf16, #tpu.memory_space<vmem>>, vector<16x48xbf16>
    %c0_1 = arith.constant 0 : index
    %c0_2 = arith.constant 0 : index
    %1 = vector.load %arg2[%c0_1, %c0_2] : memref<48x128xbf16, #tpu.memory_space<vmem>>, vector<48x128xbf16>
    %cst = arith.constant dense<0.000000e+00> : vector<16x128xf32>
    %2 = tpu.matmul %0, %1, %cst {dimension_numbers = #tpu.dot_dimension_numbers<[1], [0], [0], [1], [0, 0, 1, 1], [], []>} : vector<16x48xbf16>, vector<48x128xbf16>, vector<16x128xf32> -> vector<16x128xf32>
    %c0_3 = arith.constant 0 : index
    %c0_4 = arith.constant 0 : index
    %3 = vector.load %arg3[%c0_3, %c0_4] : memref<1x128xf32, #tpu.memory_space<vmem>>, vector<1x128xf32>
    %4 = vector.broadcast %3 : vector<1x128xf32> to vector<16x128xf32>
    %5 = arith.addf %2, %4 : vector<16x128xf32>
    %cst_5 = arith.constant dense<0.000000e+00> : vector<16xf32>
    %6 = vector.multi_reduction <add>, %5, %cst_5 [1] : vector<16x128xf32> to vector<16xf32>
    %7 = vector.shape_cast %6 : vector<16xf32> to vector<16x1xf32>
    %8 = arith.mulf %5, %5 : vector<16x128xf32>
    %cst_6 = arith.constant dense<0.000000e+00> : vector<16xf32>
    %9 = vector.multi_reduction <add>, %8, %cst_6 [1] : vector<16x128xf32> to vector<16xf32>
    %10 = vector.shape_cast %9 : vector<16xf32> to vector<16x1xf32>
    %cst_7 = arith.constant 7.812500e-03 : f32
    %11 = vector.broadcast %cst_7 : f32 to vector<16x1xf32>
    %12 = arith.mulf %7, %11 : vector<16x1xf32>
    %cst_8 = arith.constant 7.812500e-03 : f32
    %13 = vector.broadcast %cst_8 : f32 to vector<16x1xf32>
    %14 = arith.mulf %10, %13 : vector<16x1xf32>
    %15 = arith.mulf %12, %12 : vector<16x1xf32>
    %16 = arith.subf %14, %15 : vector<16x1xf32>
    %cst_9 = arith.constant 0.000000e+00 : f32
    %17 = vector.broadcast %cst_9 : f32 to vector<16x1xf32>
    %18 = arith.maximumf %16, %17 : vector<16x1xf32>
    %19 = vector.broadcast %12 : vector<16x1xf32> to vector<16x128xf32>
    %20 = arith.subf %5, %19 : vector<16x128xf32>
    %c0_10 = arith.constant 0 : index
    %c0_11 = arith.constant 0 : index
    %21 = vector.load %arg4[%c0_10, %c0_11] : memref<1x128xf32, #tpu.memory_space<vmem>>, vector<1x128xf32>
    %cst_12 = arith.constant 9.99999996E-13 : f32
    %22 = vector.broadcast %cst_12 : f32 to vector<16x1xf32>
    %23 = arith.addf %18, %22 : vector<16x1xf32>
    %24 = math.rsqrt %23 : vector<16x1xf32>
    %25 = vector.broadcast %21 : vector<1x128xf32> to vector<16x128xf32>
    %26 = vector.broadcast %24 : vector<16x1xf32> to vector<16x128xf32>
    %27 = arith.mulf %25, %26 : vector<16x128xf32>
    %28 = arith.mulf %20, %27 : vector<16x128xf32>
    %c0_13 = arith.constant 0 : index
    %c0_14 = arith.constant 0 : index
    %29 = vector.load %arg5[%c0_13, %c0_14] : memref<1x128xf32, #tpu.memory_space<vmem>>, vector<1x128xf32>
    %30 = vector.broadcast %29 : vector<1x128xf32> to vector<16x128xf32>
    %31 = arith.addf %28, %30 : vector<16x128xf32>
    %32 = arith.truncf %31 : vector<16x128xf32> to vector<16x128xbf16>
    %c0_15 = arith.constant 0 : index
    %c0_16 = arith.constant 0 : index
    %33 = vector.load %arg6[%c0_15, %c0_16] : memref<16x128xbf16, #tpu.memory_space<vmem>>, vector<16x128xbf16>
    tpu.vector_store %arg6[%c0_15, %c0_16], %32 {strides = array<i32>} : memref<16x128xbf16, #tpu.memory_space<vmem>>, vector<16x128xbf16>,
    return
  }
  func.func @transform_0(%arg0: i32) -> (i32, i32) {
    %c0_i32 = arith.constant 0 : i32
    %c0_i32_0 = arith.constant 0 : i32
    return %arg0, %c0_i32 : i32, i32
  }
  func.func @transform_1(%arg0: i32) -> (i32, i32) {
    %c0_i32 = arith.constant 0 : i32
    %c0_i32_0 = arith.constant 0 : i32
    %c0_i32_1 = arith.constant 0 : i32
    return %c0_i32, %c0_i32_0 : i32, i32
  }
  func.func @transform_2(%arg0: i32) -> (i32, i32) {
    %c0_i32 = arith.constant 0 : i32
    %c0_i32_0 = arith.constant 0 : i32
    %c0_i32_1 = arith.constant 0 : i32
    return %c0_i32, %c0_i32_0 : i32, i32
  }
  func.func @transform_3(%arg0: i32) -> (i32, i32) {
    %c0_i32 = arith.constant 0 : i32
    %c0_i32_0 = arith.constant 0 : i32
    %c0_i32_1 = arith.constant 0 : i32
    return %c0_i32, %c0_i32_0 : i32, i32
  }
  func.func @transform_4(%arg0: i32) -> (i32, i32) {
    %c0_i32 = arith.constant 0 : i32
    %c0_i32_0 = arith.constant 0 : i32
    %c0_i32_1 = arith.constant 0 : i32
    return %c0_i32, %c0_i32_0 : i32, i32
  }
  func.func @transform_5(%arg0: i32) -> (i32, i32) {
    %c0_i32 = arith.constant 0 : i32
    %c0_i32_0 = arith.constant 0 : i32
    return %arg0, %c0_i32 : i32, i32
  }
}

</mosaic_0001>

<bundles_post_ra>
// kernel: tpu_custom_call.1
= control target key start
LH: loop header
LB: loop body
LE: loop exit
PB: predicated region body
PF: predicated region fallthrough
CT: control target
= control target key end

     0   :  { %10 = vsyncpa [#allocation3], 0  ;;  %s367_s0 = inlined_call_operand.hbm [shape: bf16[16,48], index: 0, kind: input, shape index: {}]   ;;  %s368_s1 = inlined_call_operand.hbm [shape: bf16[48,128], index: 1, kind: input, shape index: {}]   ;;  %s369_s2 = inlined_call_operand.vmem [shape: f32[1,128], index: 2, kind: input, shape index: {}]   ;;  %s370_s3 = inlined_call_operand.vmem [shape: f32[1,128], index: 3, kind: input, shape index: {}]   ;;  %s371_s4 = inlined_call_operand.vmem [shape: f32[1,128], index: 4, kind: input, shape index: {}]   ;;  %s372_s5 = inlined_call_operand.hbm [shape: bf16[16,128], index: 5, kind: output, shape index: {}]  }
   0x1   :  { %11 = vsyncpa [#allocation6], 0 }
   0x2   :  { %12 = vsyncpa [#allocation4], 0  ;;  %s17_s20 = sshll.u32 %s367_s0, 4  ;;  %s305_s21 = smov [#allocation2]   ;;  %s18_s20 = int_to_ptr.hbm [resolvable:$true] %s17_s20 }
   0x3   :  { %s19_s22 = sshll.u32 %s305_s21, 4  ;;  %s30_s25 = sshll.u32 %s368_s1, 4  ;;  %s20_s22 = int_to_ptr.vmem [resolvable:$true] %s19_s22  ;;  %s31_s25 = int_to_ptr.hbm [resolvable:$true] %s30_s25 }
   0x4   :  { %s306_s26 = smov 64   ;;  %s307_s27 = smov 4  }
   0x5   :  { %25 = dma.hbm_to_vmem [thread:$0]  %s18_s20, 128, %s20_s22, [#allocation3], %s306_s26, %s306_s26, %s307_s27  }
   0x6   :  { %s308_s28 = smov [#allocation5]  }
   0x7   :  { %s32_s29 = sshll.u32 %s308_s28, 4  ;;  %s33_s29 = int_to_ptr.vmem [resolvable:$true] %s32_s29 }
   0x8   :  { %38 = dma.hbm_to_vmem [thread:$0]  %s31_s25, 384, %s33_s29, [#allocation6], %s306_s26, %s306_s26, %s307_s27  }
   0x9   :  { %299 = dma.done.wait [#allocation3], 128  }
   0xa   :  { %300 = vsyncadd [#allocation3], 4294967168 }
   0xb   :  { %301 = dma.done.wait [#allocation6], 384  }
   0xc   :  { %302 = vsyncadd [#allocation6], 4294966912  ;;  %v209_v0 = vld [vmem:[#allocation5 + $0x10] sm:$0xff]  ;;  %v208_v1 = vld [vmem:[#allocation5 + $0x8] sm:$0xff]  ;;  %vm89_vm0 = vcmask 392192   ;;  %s309_s8 = smov [#allocation7]  }
   0xd   :  { %98 = vmatpush.bf16.msra.mxu0 %v209_v0  ;;  %v207_v2 = vld [vmem:[#allocation5] sm:$0xff]  ;;  %v206_v3 = vld [vmem:[#allocation2] sm:$0xff]  ;;  %s175_s11 = sshll.u32 %s372_s5, 4  ;;  %s176_s11 = int_to_ptr.hbm [resolvable:$true] %s175_s11 }
   0xe   :  { %v220_v4 = vld [vmem:[%s369_s2] ss:$0 sm:$0xff] }
   0xf   :  { %v221_v36 = vld [vmem:[%s370_s3] ss:$0 sm:$0xff]  ;;  %s173_s3 = sshll.u32 %s309_s8, 4  ;;  %s174_s3 = int_to_ptr.vmem [resolvable:$true] %s173_s3 }
  0x10   :  { %v222_v47 = vld [vmem:[%s371_s4] ss:$0 sm:$0xff] }
  0x11   :  { %99 = vmatpush.bf16.msra.mxu0 %v208_v1 }
  0x15   :  { %100 = vmatpush.bf16.msra.mxu0 %v207_v2 }
  0x18   :  { %205 = vmatmul.msk.bf16.vlgmr.msra.gmra.mxu0 %vm89_vm0, %v206_v3 }
  0x95   :  { %v102_v5 = vpop.f32.mrf.mxu0 }
  0x96   :  { %v103_v6 = vadd.f32 %v220_v4, %v102_v5 }
  0x98   :  { %107 = vadd.xlane.f32.xlu0 %v103_v6  ;;  %v111_v7 = vmul.f32 %v103_v6, %v103_v6 }
  0x9a   :  { %113 = vadd.xlane.f32.xlu1 %v111_v7 }
  0x9d   :  { %v104_v8 = vpop.f32.mrf.mxu0 }
  0x9e   :  { %v105_v9 = vadd.f32 %v220_v4, %v104_v8 }
  0xa0   :  { %109 = vadd.xlane.f32.xlu0 %v105_v9  ;;  %v112_v10 = vmul.f32 %v105_v9, %v105_v9 }
  0xa2   :  { %115 = vadd.xlane.f32.xlu1 %v112_v10 }
 0x10b   :  { %v108_v11 = vpop.xlane.xlu0 %107 }
 0x10c   :  { %v117_v12 = vmul.f32 0.0078125, %v108_v11 }
 0x10d   :  { %v114_v13 = vpop.xlane.xlu1 %113 }
 0x10e   :  { %v121_v14 = vmul.f32 %v117_v12, %v117_v12  ;;  %v119_v15 = vmul.f32 0.0078125, %v114_v13  ;;  %v127_v42 = vsub.f32 %v103_v6, %v117_v12 }
 0x110   :  { %v123_v16 = vsub.f32 %v119_v15, %v121_v14 }
 0x112   :  { %v125_v17 = vmax.f32 %v123_v16, 0.0 }
 0x113   :  { %v110_v18 = vpop.xlane.xlu0 %109 }
 0x114   :  { %v130_v19 = vadd.f32 1e-12, %v125_v17  ;;  %v118_v20 = vmul.f32 0.0078125, %v110_v18 }
 0x115   :  { %v116_v21 = vpop.xlane.xlu1 %115 }
 0x116   :  { %223 = vrsqrt.f32 %v130_v19  ;;  %v122_v22 = vmul.f32 %v118_v20, %v118_v20  ;;  %v120_v23 = vmul.f32 0.0078125, %v116_v21  ;;  %vm138_vm2 = vweird.f32 %v130_v19 }
 0x117   :  { %v128_v44 = vsub.f32 %v105_v9, %v118_v20 }
 0x118   :  { %v124_v24 = vsub.f32 %v120_v23, %v122_v22 }
 0x11a   :  { %v126_v25 = vmax.f32 %v124_v24, 0.0 }
 0x11c   :  { %v224_v26 = vpop.eup %223  ;;  %v131_v28 = vadd.f32 1e-12, %v126_v25 }
 0x11d   :  { %v133_v27 = vmul.f32 %v224_v26, %v130_v19  ;;  %vm139_vm1 = vweird.f32 %v224_v26 }
 0x11e   :  { %225 = vrsqrt.f32 %v131_v28  ;;  %vm140_vm3 = vmor %vm138_vm2, %vm139_vm1  ;;  %vm148_vm5 = vweird.f32 %v131_v28 }
 0x11f   :  { %v134_v29 = vmul.f32 %v224_v26, %v133_v27 }
 0x121   :  { %v135_v30 = vmul.f32 0.5, %v134_v29 }
 0x123   :  { %v136_v31 = vsub.f32 1.5, %v135_v30 }
 0x124   :  { %v226_v32 = vpop.eup %225 }
 0x125   :  { %v137_v33 = vmul.f32 %v224_v26, %v136_v31  ;;  %v143_v34 = vmul.f32 %v226_v32, %v131_v28  ;;  %vm149_vm4 = vweird.f32 %v226_v32 }
 0x126   :  { %vm150_vm6 = vmor %vm148_vm5, %vm149_vm4 }
 0x127   :  { %v144_v35 = vmul.f32 %v226_v32, %v143_v34  ;;  %v141_v37 = vsel %vm140_vm3, %v224_v26, %v137_v33 }
 0x128   :  { %v155_v40 = vmul.f32 %v221_v36, %v141_v37 }
 0x129   :  { %v145_v38 = vmul.f32 0.5, %v144_v35 }
 0x12a   :  { %v157_v46 = vmul.f32 %v155_v40, %v127_v42 }
 0x12b   :  { %v146_v39 = vsub.f32 1.5, %v145_v38 }
 0x12c   :  { %v163_v49 = vadd.f32 %v222_v47, %v157_v46 }
 0x12d   :  { %v147_v41 = vmul.f32 %v226_v32, %v146_v39 }
 0x12f   :  { %v151_v43 = vsel %vm150_vm6, %v226_v32, %v147_v41 }
 0x130   :  { %v156_v45 = vmul.f32 %v221_v36, %v151_v43 }
 0x132   :  { %v158_v48 = vmul.f32 %v156_v45, %v128_v44 }
 0x134   :  { %v164_v50 = vadd.f32 %v222_v47, %v158_v48 }
 0x136   :  { %v213_v51 = vpack.c.bf16 %v164_v50, %v163_v49 }
 0x138   :  { %214 = vst [vmem:[#allocation7] sm:$0xff] %v213_v51  }
 0x139   :  { %181 = dma.vmem_to_hbm [thread:$0]  %s174_s3, 128, %s176_s11, [#allocation4], %s306_s26, %s306_s26, %s307_s27  }
 0x13a   :  { %303 = dma.done.wait [#allocation4], 128  }
 0x13b   :  { %304 = vsyncadd [#allocation4], 4294967168 }
 0x13c   :  { %186 = vsyncpa [#allocation3], 1 }
 0x13d   :  { %187 = vsyncpa [#allocation6], 1 }
 0x13e   :  { %188 = vsyncpa [#allocation4], 1 }

</bundles_post_ra>
